<compile_context>
chip_gen: v7x
topology: tpu7x:2x2x1
jax: 0.10.0
libtpu: 0.0.40
codegen_flags: <defaults>
</compile_context>

<pallas_src>
import math

import jax
import jax.numpy as jnp
from jax.experimental import pallas as pl
from jax.experimental.pallas import tpu as pltpu


def _round_up(x, m):
    return (x + m - 1) // m * m


def fc_kernel(x_ref, w_ref, b_ref, o_ref):
    # x_ref: (TM, Kp) bf16, w_ref: (Kp, Hp) bf16 (resident),
    # b_ref: (TM, Hp) f32 (per-row effective bias), o_ref: (TM, Hp) f32
    acc = jnp.dot(x_ref[...], w_ref[...], preferred_element_type=jnp.float32)
    o_ref[...] = acc + b_ref[...]


def forward_model(features, action, w_t, b, *, n_actions, indim):
    """Pallas implementation of ForwardModel.forward.

    features: any shape that flattens to (B, indim)  (e.g. NCHW conv features)
    action:   (B,) int32 in [0, n_actions)
    w_t:      (indim + n_actions, hidden_dim) float32   (transposed torch weight)
    b:        (hidden_dim,) float32
    """
    H = w_t.shape[1]
    w_act = w_t[:n_actions, :]          # (n_actions, H) -- one-hot rows
    w_feat = w_t[n_actions:, :]         # (indim, H)     -- feature rows

    feat = features.reshape(-1, indim).astype(jnp.float32)      # (B, indim)
    B = feat.shape[0]

    # one_hot(action) @ W_act is a row gather -> fold into a per-row bias.
    b_eff = b[None, :].astype(jnp.float32) + jnp.take(w_act, action, axis=0).astype(jnp.float32)  # (B, H)

    # ---- Pad to MXU / vreg friendly shapes ---------------------------------
    LANE, SUBLANE = 128, 8
    Kp = _round_up(indim, LANE)                     # aligned contraction dim
    Hp = _round_up(H, LANE)                         # lane-dense output stores
    TM = LANE if B >= LANE else _round_up(B, SUBLANE)
    Bp = _round_up(B, TM)

    # Zero-pad + cast (wrapper-side, XLA) the matmul operands to bf16; keep the
    # bias / accumulation in f32.
    feat_p = jnp.zeros((Bp, Kp), jnp.bfloat16).at[:B, :indim].set(feat.astype(jnp.bfloat16))
    w_p = jnp.zeros((Kp, Hp), jnp.bfloat16).at[:indim, :H].set(w_feat.astype(jnp.bfloat16))
    b_p = jnp.zeros((Bp, Hp), jnp.float32).at[:B, :H].set(b_eff)

    grid = (Bp // TM,)

    cost = pl.CostEstimate(
        flops=2 * Bp * Kp * Hp,
        transcendentals=0,
        bytes_accessed=2 * (Bp * Kp + Kp * Hp) + 4 * (Bp * Hp) * 2,
    )

    # Double-buffered TM-tiles (x, bias, out) + resident weight, with headroom;
    # comfortably under v7x's 64 MiB VMEM.
    tile_bytes = 2 * (TM * Kp * 2 + TM * Hp * 4 + TM * Hp * 4) + Kp * Hp * 2
    vmem_limit = int(min(max(4 * tile_bytes, 4 << 20), 64 << 20))

    out = pl.pallas_call(
        fc_kernel,
        out_shape=jax.ShapeDtypeStruct((Bp, Hp), jnp.float32),
        grid_spec=pltpu.PrefetchScalarGridSpec(
            num_scalar_prefetch=0,
            grid=grid,
            in_specs=[
                pl.BlockSpec((TM, Kp), lambda i: (i, 0)),   # feature tile (pipelined)
                pl.BlockSpec((Kp, Hp), lambda i: (0, 0)),   # weight: resident across grid
                pl.BlockSpec((TM, Hp), lambda i: (i, 0)),   # per-row bias tile
            ],
            out_specs=pl.BlockSpec((TM, Hp), lambda i: (i, 0)),
        ),
        compiler_params=pltpu.CompilerParams(
            dimension_semantics=("parallel",),              # shards across TCs on v7x
            vmem_limit_bytes=vmem_limit,
        ),
        cost_estimate=cost,
    )(feat_p, w_p, b_p)

    return out[:B, :H]


def init_linear_params(key, in_features, out_features):
    """Deterministic init matching nn.Linear defaults: U(-1/sqrt(fan_in), +1/sqrt(fan_in))."""
    kw, kb = jax.random.split(key)
    bound = 1.0 / math.sqrt(in_features)
    # torch stores weight as (out, in); we keep it pre-transposed as (in, out) for x @ W.
    w_t = jax.random.uniform(kw, (in_features, out_features), jnp.float32, -bound, bound)
    b = jax.random.uniform(kb, (out_features,), jnp.float32, -bound, bound)
    return w_t, b


if __name__ == "__main__":
    # Small shapes consistent with the module:
    #   features: (B, C, H, W) = (2, 4, 4, 4)  ->  indim = 64
    #   n_actions = 6, hidden_dim = 32
    B, C, Hs, Ws = 2, 4, 4, 4
    n_actions = 6
    indim = C * Hs * Ws
    hidden_dim = 32

    key = jax.random.PRNGKey(0)
    k_feat, k_params = jax.random.split(key)

    features = jax.random.normal(k_feat, (B, C, Hs, Ws), dtype=jnp.float32)
    action = jnp.array([1, 3], dtype=jnp.int32)

    w_t, b = init_linear_params(k_params, indim + n_actions, hidden_dim)

    out = forward_model(features, action, w_t, b, n_actions=n_actions, indim=indim)
    out = jax.block_until_ready(out)

    # --- Reference checks in plain JAX --------------------------------------
    # 1) Module semantics (full f32, one-hot + concat) — loose tol for bf16 matmul inputs.
    one_hot = jax.nn.one_hot(action, n_actions, dtype=jnp.float32)
    x_full = jnp.concatenate([one_hot, features.reshape(-1, indim)], axis=-1)
    ref_f32 = x_full @ w_t + b
    # 2) Precision-matched reference (same bf16 rounding of matmul inputs, f32 accumulate).
    feat_bf = features.reshape(-1, indim).astype(jnp.bfloat16).astype(jnp.float32)
    wfeat_bf = w_t[n_actions:, :].astype(jnp.bfloat16).astype(jnp.float32)
    b_eff = b[None, :] + jnp.take(w_t[:n_actions, :], action, axis=0)
    ref_bf = feat_bf @ wfeat_bf + b_eff

    assert out.shape == (B, hidden_dim)
    assert jnp.allclose(out, ref_bf, atol=1e-3, rtol=1e-3), "kernel mismatch vs precision-matched ref"
    assert jnp.allclose(out, ref_f32, atol=5e-2, rtol=5e-2), "kernel mismatch vs f32 module semantics"

    print("KERNEL_OK")
</pallas_src>

<mosaic_0001>
module attributes {stable_mosaic.version = 11 : i64} {
  func.func @fc_kernel(%arg0: i32, %arg1: memref<8x128xbf16, #tpu.memory_space<vmem>>, %arg2: memref<128x128xbf16, #tpu.memory_space<vmem>>, %arg3: memref<8x128xf32, #tpu.memory_space<vmem>>, %arg4: memref<8x128xf32, #tpu.memory_space<vmem>>) attributes {dimension_semantics = [#tpu.dimension_semantics<parallel>], iteration_bounds = array<i64: 1>, scalar_prefetch = 0 : i64, scratch_operands = 0 : i64, tpu.core_type = #tpu.core_type<tc>, window_params = [{transform_indices = @transform_0, window_bounds = array<i64: 8, 128>}, {pipeline_mode = #tpu.pipeline_mode<synchronous>, transform_indices = @transform_1, window_bounds = array<i64: 128, 128>}, {transform_indices = @transform_2, window_bounds = array<i64: 8, 128>}, {transform_indices = @transform_3, window_bounds = array<i64: 8, 128>}]} {
    %c0 = arith.constant 0 : index
    %c0_0 = arith.constant 0 : index
    %0 = vector.load %arg1[%c0, %c0_0] : memref<8x128xbf16, #tpu.memory_space<vmem>>, vector<8x128xbf16>
    %c0_1 = arith.constant 0 : index
    %c0_2 = arith.constant 0 : index
    %1 = vector.load %arg2[%c0_1, %c0_2] : memref<128x128xbf16, #tpu.memory_space<vmem>>, vector<128x128xbf16>
    %cst = arith.constant dense<0.000000e+00> : vector<8x128xf32>
    %2 = tpu.matmul %0, %1, %cst {dimension_numbers = #tpu.dot_dimension_numbers<[1], [0], [0], [1], [0, 0, 1, 1], [], []>} : vector<8x128xbf16>, vector<128x128xbf16>, vector<8x128xf32> -> vector<8x128xf32>
    %c0_3 = arith.constant 0 : index
    %c0_4 = arith.constant 0 : index
    %3 = vector.load %arg3[%c0_3, %c0_4] : memref<8x128xf32, #tpu.memory_space<vmem>>, vector<8x128xf32>
    %4 = arith.addf %2, %3 : vector<8x128xf32>
    %c0_5 = arith.constant 0 : index
    %c0_6 = arith.constant 0 : index
    %5 = vector.load %arg4[%c0_5, %c0_6] : memref<8x128xf32, #tpu.memory_space<vmem>>, vector<8x128xf32>
    tpu.vector_store %arg4[%c0_5, %c0_6], %4 {strides = array<i32>} : memref<8x128xf32, #tpu.memory_space<vmem>>, vector<8x128xf32>,
    return
  }
  func.func @transform_0(%arg0: i32) -> (i32, i32) {
    %c0_i32 = arith.constant 0 : i32
    %c0_i32_0 = arith.constant 0 : i32
    return %arg0, %c0_i32 : i32, i32
  }
  func.func @transform_1(%arg0: i32) -> (i32, i32) {
    %c0_i32 = arith.constant 0 : i32
    %c0_i32_0 = arith.constant 0 : i32
    %c0_i32_1 = arith.constant 0 : i32
    return %c0_i32, %c0_i32_0 : i32, i32
  }
  func.func @transform_2(%arg0: i32) -> (i32, i32) {
    %c0_i32 = arith.constant 0 : i32
    %c0_i32_0 = arith.constant 0 : i32
    return %arg0, %c0_i32 : i32, i32
  }
  func.func @transform_3(%arg0: i32) -> (i32, i32) {
    %c0_i32 = arith.constant 0 : i32
    %c0_i32_0 = arith.constant 0 : i32
    return %arg0, %c0_i32 : i32, i32
  }
}

</mosaic_0001>

<bundles_post_ra>
// kernel: tpu_custom_call.1
= control target key start
LH: loop header
LB: loop body
LE: loop exit
PB: predicated region body
PF: predicated region fallthrough
CT: control target
= control target key end

     0   :  { %8 = vsyncpa [#allocation3], 0  ;;  %s399_s0 = inlined_call_operand.hbm [shape: bf16[8,128], index: 0, kind: input, shape index: {}]   ;;  %s400_s1 = inlined_call_operand.hbm [shape: bf16[128,128], index: 1, kind: input, shape index: {}]   ;;  %s401_s2 = inlined_call_operand.hbm [shape: f32[8,128], index: 2, kind: input, shape index: {}]   ;;  %s402_s3 = inlined_call_operand.hbm [shape: f32[8,128], index: 3, kind: output, shape index: {}]  }
   0x1   :  { %9 = vsyncpa [#allocation6], 0 }
   0x2   :  { %10 = vsyncpa [#allocation4], 0  ;;  %s323_s12 = smov [#allocation5]   ;;  %s229_s16 = scalar_lea.hbm %s400_s1, 1024 }
   0x3   :  { %s26_s13 = sshll.u32 %s323_s12, 4  ;;  %p230_p0 = scmp.ne.s32.totalorder %s400_s1, %s229_s16  ;;  %s27_s13 = int_to_ptr.vmem [resolvable:$true] %s26_s13 }
   0x4   :  { %p233_p1 = scmp.lt.u32.totalorder %s229_s16, %s400_s1 }
   0x6   :  { %p235_p2 = pnand %p233_p1, %p230_p0 }
   0x8   :  { %238 = shalt.err (!%p235_p2)
}
   0x9   :  { %s239_s21 = scalar_lea.vmem %s27_s13, 1024  ;;  %p244_p4 = scmp.lt.s32.totalorder %s27_s13, %s27_s13 }
   0xa   :  { %p240_p3 = scmp.ne.s32.totalorder %s27_s13, %s239_s21  ;;  %p245_p5 = scmp.lt.s32.totalorder %s239_s21, %s239_s21 }
   0xc   :  { %p246_p6 = por %p245_p5, %p244_p4 }
   0xe   :  { %p247_p7 = pnand %p246_p6, %p240_p3 }
  0x10   :  { %250 = shalt.err (!%p247_p7)
}
  0x11   :  { %s324_s22 = smov 64   ;;  %s325_s23 = smov 4  }
  0x12   :  { %32 = dma.hbm_to_vmem [thread:$0]  %s400_s1, 1024, %s27_s13, [#allocation6], %s324_s22, %s324_s22, %s325_s23  }
  0x13   :  { %s326_s26 = smov [#allocation2]   ;;  %s327_s28 = smov [#allocation7]  }
  0x14   :  { %s17_s27 = sshll.u32 %s326_s26, 4  ;;  %s39_s29 = sshll.u32 %s327_s28, 4  ;;  %s18_s27 = int_to_ptr.vmem [resolvable:$true] %s17_s27  ;;  %s40_s29 = int_to_ptr.vmem [resolvable:$true] %s39_s29 }
  0x15   :  { %s251_s5 = scalar_lea.hbm %s399_s0, 64 }
  0x16   :  { %p252_p8 = scmp.ne.s32.totalorder %s399_s0, %s251_s5  ;;  %p255_p9 = scmp.lt.u32.totalorder %s251_s5, %s399_s0 }
  0x18   :  { %p257_p10 = pnand %p255_p9, %p252_p8 }
  0x1a   :  { %260 = shalt.err (!%p257_p10)
}
  0x1b   :  { %s261_s1 = scalar_lea.vmem %s18_s27, 64  ;;  %p266_p12 = scmp.lt.s32.totalorder %s18_s27, %s18_s27 }
  0x1c   :  { %p262_p11 = scmp.ne.s32.totalorder %s18_s27, %s261_s1  ;;  %p267_p13 = scmp.lt.s32.totalorder %s261_s1, %s261_s1 }
  0x1e   :  { %p268_p0 = por %p267_p13, %p266_p12 }
  0x20   :  { %p269_p1 = pnand %p268_p0, %p262_p11 }
  0x22   :  { %272 = shalt.err (!%p269_p1)
}
  0x23   :  { %20 = dma.hbm_to_vmem [thread:$0]  %s399_s0, 64, %s18_s27, [#allocation3]  }
  0x24   :  { %s273_s14 = scalar_lea.hbm %s401_s2, 128 }
  0x25   :  { %p274_p2 = scmp.ne.s32.totalorder %s401_s2, %s273_s14  ;;  %p277_p3 = scmp.lt.u32.totalorder %s273_s14, %s401_s2 }
  0x27   :  { %p279_p4 = pnand %p277_p3, %p274_p2 }
  0x29   :  { %282 = shalt.err (!%p279_p4)
}
  0x2a   :  { %s283_s19 = scalar_lea.vmem %s40_s29, 128  ;;  %p288_p6 = scmp.lt.s32.totalorder %s40_s29, %s40_s29 }
  0x2b   :  { %p284_p5 = scmp.ne.s32.totalorder %s40_s29, %s283_s19  ;;  %p289_p7 = scmp.lt.s32.totalorder %s283_s19, %s283_s19 }
  0x2d   :  { %p290_p8 = por %p289_p7, %p288_p6 }
  0x2f   :  { %p291_p9 = pnand %p290_p8, %p284_p5 }
  0x31   :  { %294 = shalt.err (!%p291_p9)
}
  0x32   :  { %42 = dma.hbm_to_vmem [thread:$0]  %s401_s2, 128, %s40_s29, [#allocation6]  }
  0x33   :  { %317 = dma.done.wait [#allocation3], 64  }
  0x34   :  { %318 = vsyncadd [#allocation3], 4294967232 }
  0x35   :  { %319 = dma.done.wait [#allocation6], 1152  }
  0x36   :  { %320 = vsyncadd [#allocation6], 4294966144  ;;  %v328_v0 = vmov 0.0   ;;  %vm329_vm0 = vmmov 0   ;;  %v221_v1 = vld [vmem:[#allocation5] sm:$0xff]   ;;  %v222_v2 = vld [vmem:[#allocation5 + $0x8] sm:$0xff]  }
  0x37   :  { %193 = vmatprep.subr.bf16.mxu0 %v328_v0  ;;  %209 = vmatprep.mubr.msk.bf16.mxu0 %vm329_vm0, %v328_v0  ;;  %v223_v3 = vld [vmem:[#allocation5 + $0x10] sm:$0xff]   ;;  %v224_v4 = vld [vmem:[#allocation5 + $0x18] sm:$0xff]   ;;  %v225_v5 = vld [vmem:[#allocation5 + $0x20] sm:$0xff]   ;;  %s330_s2 = smov [#allocation8]  }
  0x38   :  { %194 = vmatpush3.bf16.msra.mxu0 %v221_v1  ;;  %v226_v6 = vld [vmem:[#allocation5 + $0x28] sm:$0xff]   ;;  %v227_v7 = vld [vmem:[#allocation5 + $0x30] sm:$0xff]   ;;  %v228_v8 = vld [vmem:[#allocation5 + $0x38] sm:$0xff]   ;;  %s166_s21 = sshll.u32 %s330_s2, 4  ;;  %s167_s21 = int_to_ptr.vmem [resolvable:$true] %s166_s21 }
  0x39   :  { %195 = vmatprep.subr.bf16.mxu0 %v328_v0  ;;  %v53_v9 = vld [vmem:[#allocation2] sm:$0xf]  ;;  %v70_v10 = vld [vmem:[#allocation7] sm:$0xff]  ;;  %s295_s22 = scalar_lea.vmem %s167_s21, 128  ;;  %p300_p11 = scmp.lt.s32.totalorder %s167_s21, %s167_s21 }
  0x3a   :  { %p296_p10 = scmp.ne.s32.totalorder %s167_s21, %s295_s22  ;;  %p301_p12 = scmp.lt.s32.totalorder %s295_s22, %s295_s22 }
  0x3c   :  { %196 = vmatpush3.bf16.msra.mxu0 %v222_v2  ;;  %p302_p13 = por %p301_p12, %p300_p11 }
  0x3d   :  { %197 = vmatprep.subr.bf16.mxu0 %v328_v0 }
  0x3e   :  { %p303_p0 = pnand %p302_p13, %p296_p10 }
  0x40   :  { %198 = vmatpush3.bf16.msra.mxu0 %v223_v3 }
  0x41   :  { %199 = vmatprep.subr.bf16.mxu0 %v328_v0 }
  0x44   :  { %200 = vmatpush3.bf16.msra.mxu0 %v224_v4 }
  0x45   :  { %201 = vmatprep.subr.bf16.mxu0 %v328_v0 }
  0x48   :  { %202 = vmatpush3.bf16.msra.mxu0 %v225_v5 }
  0x49   :  { %203 = vmatprep.subr.bf16.mxu0 %v328_v0 }
  0x4c   :  { %204 = vmatpush3.bf16.msra.mxu0 %v226_v6 }
  0x4d   :  { %205 = vmatprep.subr.bf16.mxu0 %v328_v0 }
  0x50   :  { %206 = vmatpush3.bf16.msra.mxu0 %v227_v7 }
  0x51   :  { %207 = vmatprep.subr.bf16.mxu0 %v328_v0 }
  0x54   :  { %208 = vmatpush3.bf16.msra.mxu0 %v228_v8 }
  0x57   :  { %210 = vmatmul.mubr.bf16.vlgmr.msra.gmra.mrb[0].mxu0 %v53_v9 }
 0x12a   :  { %v153_v11 = vpop.f32.mrb[0].mxu0 }
 0x12b   :  { %v154_v12 = vadd.f32 %v153_v11, %v70_v10  ;;  %v211_v13 = vpop.f32.mrb[1].mxu0 }
 0x12c   :  { %v156_v14 = vpop.f32.mrb[2].mxu0 }
 0x12d   :  { %159 = vst [vmem:[#allocation8] sm:$0xff] %v154_v12  ;;  %v212_v15 = vpop.f32.mrb[3].mxu0 }
 0x12e   :  { %306 = shalt.err (!%p303_p0)
}
 0x12f   :  { %s307_s25 = scalar_lea.hbm %s402_s3, 128 }
 0x130   :  { %p308_p1 = scmp.ne.s32.totalorder %s402_s3, %s307_s25  ;;  %p311_p2 = scmp.lt.u32.totalorder %s307_s25, %s402_s3 }
 0x132   :  { %p313_p3 = pnand %p311_p2, %p308_p1 }
 0x134   :  { %316 = shalt.err (!%p313_p3)
}
 0x135   :  { %169 = dma.vmem_to_hbm [thread:$0]  %s167_s21, 128, %s402_s3, [#allocation4]  }
 0x136   :  { %321 = dma.done.wait [#allocation4], 128  }
 0x137   :  { %322 = vsyncadd [#allocation4], 4294967168 }
 0x138   :  { %173 = vsyncpa [#allocation3], 1 }
 0x139   :  { %174 = vsyncpa [#allocation6], 1 }
 0x13a   :  { %175 = vsyncpa [#allocation4], 1 }

</bundles_post_ra>
